<compile_context>
chip_gen: v5e
topology: v5e:2x2
jax: 0.10.0
libtpu: 0.0.40
codegen_flags: <defaults>
</compile_context>

<pallas_src>
import functools

import jax
import jax.numpy as jnp
from jax import lax
from jax.experimental import pallas as pl
from jax.experimental.pallas import tpu as pltpu

LANE = 128          # vreg lane width     -> pad feature dims / item tile to this
SUBLANE = 8         # vreg sublane height -> user-row tile granularity
MAX_TILE_M = 512    # user-row tile cap  (sized for v7x 64 MiB VMEM; fine on v5e/v6e)
MAX_TILE_N = 512    # item-row tile cap  (scores last dim; lane-dense stores)
_EPS = 1e-12        # F.normalize default eps


def _round_up(x, m):
    return ((x + m - 1) // m) * m


def _pad2(x, rows, cols):
    return jnp.pad(x, ((0, rows - x.shape[0]), (0, cols - x.shape[1])))


# --------------------------------------------------------------------------- #
# Stage 1: encode one tower (metadata MLP + add + projection + L2 normalize)
# --------------------------------------------------------------------------- #
def _encode_kernel(scale, txt_ref, meta_ref, wm_ref, bm_ref, wp_ref, bp_ref,
                   out_ref):
    # metadata encoder: Linear -> ReLU   (Dropout p=0.2 is identity in eval)
    m = lax.dot_general(meta_ref[...], wm_ref[...], (((1,), (0,)), ((), ())),
                        preferred_element_type=jnp.float32) + bm_ref[...]
    x = txt_ref[...] + jnp.maximum(m, 0.0)
    # projection
    p = lax.dot_general(x, wp_ref[...], (((1,), (0,)), ((), ())),
                        preferred_element_type=jnp.float32) + bp_ref[...]
    # F.normalize(p=2, dim=1) == x * rsqrt(max(sum(x*x), eps^2))  (EUP rsqrt).
    # `scale` folds 1/temperature into the (much smaller) embedding tensor so
    # the big (Bu, Bi) scores tile is stored straight out of the MXU.
    sumsq = jnp.sum(p * p, axis=1, keepdims=True)
    inv = lax.rsqrt(jnp.maximum(sumsq, _EPS * _EPS))
    out_ref[...] = (p * (inv * scale)).astype(out_ref.dtype)


def _encode(txt, meta, w_m, b_m, w_p, b_p, scale, tile):
    B_pad, D_pad = txt.shape
    M_pad = meta.shape[1]
    P_pad = w_p.shape[1]
    return pl.pallas_call(
        functools.partial(_encode_kernel, scale),
        out_shape=jax.ShapeDtypeStruct((B_pad, P_pad), jnp.bfloat16),
        grid=(B_pad // tile,),
        in_specs=[
            pl.BlockSpec((tile, D_pad), lambda i: (i, 0)),
            pl.BlockSpec((tile, M_pad), lambda i: (i, 0)),
            pl.BlockSpec((M_pad, D_pad), lambda i: (0, 0)),  # VMEM-resident
            pl.BlockSpec((1, D_pad), lambda i: (0, 0)),
            pl.BlockSpec((D_pad, P_pad), lambda i: (0, 0)),
            pl.BlockSpec((1, P_pad), lambda i: (0, 0)),
        ],
        out_specs=pl.BlockSpec((tile, P_pad), lambda i: (i, 0)),
        compiler_params=pltpu.CompilerParams(
            dimension_semantics=("parallel",)),
    )(txt, meta, w_m, b_m, w_p, b_p)


# --------------------------------------------------------------------------- #
# Stage 2: scaled similarity scores = (u_norm/T) @ i_norm.T, tiled over (Bu, Bi)
# --------------------------------------------------------------------------- #
def _scores_kernel(u_ref, i_ref, out_ref):
    # Contract the last dims of both operands directly (no in-kernel transpose).
    out_ref[...] = lax.dot_general(u_ref[...], i_ref[...],
                                   (((1,), (1,)), ((), ())),
                                   preferred_element_type=jnp.float32)


def _scores(u_norm, i_norm, tm, tn):
    Bu_pad, P_pad = u_norm.shape
    Bi_pad = i_norm.shape[0]
    return pl.pallas_call(
        _scores_kernel,
        out_shape=jax.ShapeDtypeStruct((Bu_pad, Bi_pad), jnp.float32),
        grid=(Bu_pad // tm, Bi_pad // tn),
        in_specs=[
            pl.BlockSpec((tm, P_pad), lambda i, j: (i, 0)),
            pl.BlockSpec((tn, P_pad), lambda i, j: (j, 0)),
        ],
        out_specs=pl.BlockSpec((tm, tn), lambda i, j: (i, j)),
        compiler_params=pltpu.CompilerParams(
            dimension_semantics=("parallel", "parallel")),
    )(u_norm, i_norm)


# --------------------------------------------------------------------------- #
# Wrapper
# --------------------------------------------------------------------------- #
def prepare_params(params):
    """One-time prep (outside jit): transpose PyTorch (out,in) Linear weights to
    (in,out) and zero-pad every feature dim to a multiple of 128 lanes."""
    D = params["user_proj_w"].shape[1]
    P = params["user_proj_w"].shape[0]
    Mu = params["user_meta_w"].shape[1]
    Mi = params["item_meta_w"].shape[1]
    D_pad, P_pad = _round_up(D, LANE), _round_up(P, LANE)
    Mu_pad, Mi_pad = _round_up(Mu, LANE), _round_up(Mi, LANE)

    def lin(w, b, in_pad, out_pad):
        w_t = _pad2(jnp.asarray(w, jnp.float32).T, in_pad, out_pad)
        b_p = jnp.pad(jnp.asarray(b, jnp.float32),
                      (0, out_pad - b.shape[0]))[None, :]
        return w_t, b_p

    w_um, b_um = lin(params["user_meta_w"], params["user_meta_b"], Mu_pad, D_pad)
    w_im, b_im = lin(params["item_meta_w"], params["item_meta_b"], Mi_pad, D_pad)
    w_up, b_up = lin(params["user_proj_w"], params["user_proj_b"], D_pad, P_pad)
    w_ip, b_ip = lin(params["item_proj_w"], params["item_proj_b"], D_pad, P_pad)
    return {"w_um": w_um, "b_um": b_um, "w_im": w_im, "b_im": b_im,
            "w_up": w_up, "b_up": b_up, "w_ip": w_ip, "b_ip": b_ip}


@functools.partial(jax.jit, static_argnames=("temperature",))
def dual_encoder_forward(user_text_emb, item_text_emb,
                         user_metadata, item_metadata,
                         prepared, temperature=0.1):
    """Fused DualEncoderModel.forward.

    user_text_emb : (Bu, D)  item_text_emb : (Bi, D)
    user_metadata : (Bu, Mu) item_metadata : (Bi, Mi)
    returns scores (Bu, Bi) = (normalize(proj(u+meta)) @ normalize(proj(i+meta)).T) / T
    """
    Bu = user_text_emb.shape[0]
    Bi = item_text_emb.shape[0]
    Mu_pad, D_pad = prepared["w_um"].shape
    Mi_pad = prepared["w_im"].shape[0]

    # Row tiles: users need only sublane (8) alignment; items form the lane
    # (last) dim of the scores tile so they are a multiple of 128.
    tm = min(MAX_TILE_M, _round_up(Bu, SUBLANE))
    tn = min(MAX_TILE_N, _round_up(Bi, LANE))
    Bu_pad = _round_up(Bu, tm)
    Bi_pad = _round_up(Bi, tn)

    u_txt = _pad2(user_text_emb.astype(jnp.float32), Bu_pad, D_pad)
    i_txt = _pad2(item_text_emb.astype(jnp.float32), Bi_pad, D_pad)
    u_meta = _pad2(user_metadata.astype(jnp.float32), Bu_pad, Mu_pad)
    i_meta = _pad2(item_metadata.astype(jnp.float32), Bi_pad, Mi_pad)

    inv_t = 1.0 / float(temperature)
    # Each tower is encoded exactly once (no per-scores-tile recompute).
    u_norm = _encode(u_txt, u_meta, prepared["w_um"], prepared["b_um"],
                     prepared["w_up"], prepared["b_up"], inv_t, tm)
    i_norm = _encode(i_txt, i_meta, prepared["w_im"], prepared["b_im"],
                     prepared["w_ip"], prepared["b_ip"], 1.0, tn)

    scores = _scores(u_norm, i_norm, tm, tn)
    return scores[:Bu, :Bi]


# --------------------------------------------------------------------------- #
# Parameter init + pure-JAX reference
# --------------------------------------------------------------------------- #
def init_params(key, embedding_dim, projection_dim,
                user_metadata_dim, item_metadata_dim):
    ks = jax.random.split(key, 8)
    scale = 0.1

    def lin(kw, kb, d_in, d_out):
        w = jax.random.normal(kw, (d_out, d_in), jnp.float32) * scale
        b = jax.random.normal(kb, (d_out,), jnp.float32) * scale
        return w, b

    user_meta_w, user_meta_b = lin(ks[0], ks[1], user_metadata_dim, embedding_dim)
    item_meta_w, item_meta_b = lin(ks[2], ks[3], item_metadata_dim, embedding_dim)
    user_proj_w, user_proj_b = lin(ks[4], ks[5], embedding_dim, projection_dim)
    item_proj_w, item_proj_b = lin(ks[6], ks[7], embedding_dim, projection_dim)
    return {
        "user_meta_w": user_meta_w, "user_meta_b": user_meta_b,
        "item_meta_w": item_meta_w, "item_meta_b": item_meta_b,
        "user_proj_w": user_proj_w, "user_proj_b": user_proj_b,
        "item_proj_w": item_proj_w, "item_proj_b": item_proj_b,
    }


def reference_forward(user_text_emb, item_text_emb, user_metadata, item_metadata,
                      params, temperature=0.1):
    eps = 1e-12

    def encode(x, meta, wm, bm, wp, bp):
        m = jnp.maximum(meta @ wm.T + bm, 0.0)   # Dropout(eval) == identity
        x = x + m
        x = x @ wp.T + bp
        n = jnp.maximum(jnp.linalg.norm(x, axis=1, keepdims=True), eps)
        return x / n

    u = encode(user_text_emb, user_metadata,
               params["user_meta_w"], params["user_meta_b"],
               params["user_proj_w"], params["user_proj_b"])
    i = encode(item_text_emb, item_metadata,
               params["item_meta_w"], params["item_meta_b"],
               params["item_proj_w"], params["item_proj_b"])
    return (u @ i.T) / temperature


if __name__ == "__main__":
    # TODO(synk): SentenceTransformer text encoding (list[str] -> embeddings) has
    # no Pallas equivalent; we feed precomputed text embeddings instead.
    # Dropout layers are treated as eval-mode (identity).
    embedding_dim = 32      # sentence-transformer embedding dim (synthetic)
    projection_dim = 16
    user_metadata_dim = 8
    item_metadata_dim = 8
    num_users = 4
    num_items = 8
    temperature = 0.1

    key = jax.random.PRNGKey(0)
    k_params, k_ut, k_it, k_um, k_im = jax.random.split(key, 5)

    params = init_params(k_params, embedding_dim, projection_dim,
                         user_metadata_dim, item_metadata_dim)
    prepared = prepare_params(params)   # transpose + pad once, outside the jit

    user_text_emb = jax.random.normal(k_ut, (num_users, embedding_dim), jnp.float32)
    item_text_emb = jax.random.normal(k_it, (num_items, embedding_dim), jnp.float32)
    user_metadata = jax.random.normal(k_um, (num_users, user_metadata_dim), jnp.float32)
    item_metadata = jax.random.normal(k_im, (num_items, item_metadata_dim), jnp.float32)

    scores = dual_encoder_forward(user_text_emb, item_text_emb,
                                  user_metadata, item_metadata,
                                  prepared, temperature=temperature)
    scores = jax.block_until_ready(scores)

    ref = reference_forward(user_text_emb, item_text_emb,
                            user_metadata, item_metadata,
                            params, temperature=temperature)

    assert scores.shape == (num_users, num_items)
    # Normalized embeddings are fed to the MXU in bf16 (f32 accumulation), so
    # the tolerance vs the pure-f32 reference is loosened accordingly.
    max_diff = float(jnp.max(jnp.abs(scores - ref)))
    assert jnp.allclose(scores, ref, atol=1e-1, rtol=5e-2), (
        f"mismatch: max abs diff {max_diff}")

    print("KERNEL_OK")
</pallas_src>

<mosaic_0001>
module attributes {stable_mosaic.version = 11 : i64} {
  func.func @_encode_kernel(%arg0: i32, %arg1: memref<128x128xf32, #tpu.memory_space<vmem>>, %arg2: memref<128x128xf32, #tpu.memory_space<vmem>>, %arg3: memref<128x128xf32, #tpu.memory_space<vmem>>, %arg4: memref<1x128xf32, #tpu.memory_space<vmem>>, %arg5: memref<128x128xf32, #tpu.memory_space<vmem>>, %arg6: memref<1x128xf32, #tpu.memory_space<vmem>>, %arg7: memref<128x128xbf16, #tpu.memory_space<vmem>>) attributes {dimension_semantics = [#tpu.dimension_semantics<parallel>], iteration_bounds = array<i64: 1>, scalar_prefetch = 0 : i64, scratch_operands = 0 : i64, tpu.core_type = #tpu.core_type<tc>, window_params = [{transform_indices = @transform_0, window_bounds = array<i64: 128, 128>}, {transform_indices = @transform_1, window_bounds = array<i64: 128, 128>}, {pipeline_mode = #tpu.pipeline_mode<synchronous>, transform_indices = @transform_2, window_bounds = array<i64: 128, 128>}, {pipeline_mode = #tpu.pipeline_mode<synchronous>, transform_indices = @transform_3, window_bounds = array<i64: 1, 128>}, {pipeline_mode = #tpu.pipeline_mode<synchronous>, transform_indices = @transform_4, window_bounds = array<i64: 128, 128>}, {pipeline_mode = #tpu.pipeline_mode<synchronous>, transform_indices = @transform_5, window_bounds = array<i64: 1, 128>}, {transform_indices = @transform_6, window_bounds = array<i64: 128, 128>}]} {
    %c0 = arith.constant 0 : index
    %c0_0 = arith.constant 0 : index
    %0 = vector.load %arg2[%c0, %c0_0] : memref<128x128xf32, #tpu.memory_space<vmem>>, vector<128x128xf32>
    %c0_1 = arith.constant 0 : index
    %c0_2 = arith.constant 0 : index
    %1 = vector.load %arg3[%c0_1, %c0_2] : memref<128x128xf32, #tpu.memory_space<vmem>>, vector<128x128xf32>
    %cst = arith.constant dense<0.000000e+00> : vector<128x128xf32>
    %2 = tpu.matmul %0, %1, %cst {dimension_numbers = #tpu.dot_dimension_numbers<[1], [0], [0], [1], [0, 0, 1, 1], [], []>} : vector<128x128xf32>, vector<128x128xf32>, vector<128x128xf32> -> vector<128x128xf32>
    %c0_3 = arith.constant 0 : index
    %c0_4 = arith.constant 0 : index
    %3 = vector.load %arg4[%c0_3, %c0_4] : memref<1x128xf32, #tpu.memory_space<vmem>>, vector<1x128xf32>
    %4 = vector.broadcast %3 : vector<1x128xf32> to vector<128x128xf32>
    %5 = arith.addf %2, %4 : vector<128x128xf32>
    %c0_5 = arith.constant 0 : index
    %c0_6 = arith.constant 0 : index
    %6 = vector.load %arg1[%c0_5, %c0_6] : memref<128x128xf32, #tpu.memory_space<vmem>>, vector<128x128xf32>
    %cst_7 = arith.constant 0.000000e+00 : f32
    %7 = vector.broadcast %cst_7 : f32 to vector<128x128xf32>
    %8 = arith.maximumf %5, %7 : vector<128x128xf32>
    %9 = arith.addf %6, %8 : vector<128x128xf32>
    %c0_8 = arith.constant 0 : index
    %c0_9 = arith.constant 0 : index
    %10 = vector.load %arg5[%c0_8, %c0_9] : memref<128x128xf32, #tpu.memory_space<vmem>>, vector<128x128xf32>
    %cst_10 = arith.constant dense<0.000000e+00> : vector<128x128xf32>
    %11 = tpu.matmul %9, %10, %cst_10 {dimension_numbers = #tpu.dot_dimension_numbers<[1], [0], [0], [1], [0, 0, 1, 1], [], []>} : vector<128x128xf32>, vector<128x128xf32>, vector<128x128xf32> -> vector<128x128xf32>
    %c0_11 = arith.constant 0 : index
    %c0_12 = arith.constant 0 : index
    %12 = vector.load %arg6[%c0_11, %c0_12] : memref<1x128xf32, #tpu.memory_space<vmem>>, vector<1x128xf32>
    %13 = vector.broadcast %12 : vector<1x128xf32> to vector<128x128xf32>
    %14 = arith.addf %11, %13 : vector<128x128xf32>
    %15 = arith.mulf %14, %14 : vector<128x128xf32>
    %cst_13 = arith.constant dense<0.000000e+00> : vector<128xf32>
    %16 = vector.multi_reduction <add>, %15, %cst_13 [1] : vector<128x128xf32> to vector<128xf32>
    %17 = vector.shape_cast %16 : vector<128xf32> to vector<128x1xf32>
    %cst_14 = arith.constant 1.000000e-24 : f32
    %18 = vector.broadcast %cst_14 : f32 to vector<128x1xf32>
    %19 = arith.maximumf %17, %18 : vector<128x1xf32>
    %20 = math.rsqrt %19 : vector<128x1xf32>
    %cst_15 = arith.constant 1.000000e+00 : f32
    %21 = vector.broadcast %cst_15 : f32 to vector<128x1xf32>
    %22 = arith.mulf %20, %21 : vector<128x1xf32>
    %23 = vector.broadcast %22 : vector<128x1xf32> to vector<128x128xf32>
    %24 = arith.mulf %14, %23 : vector<128x128xf32>
    %25 = arith.truncf %24 : vector<128x128xf32> to vector<128x128xbf16>
    %c0_16 = arith.constant 0 : index
    %c0_17 = arith.constant 0 : index
    %26 = vector.load %arg7[%c0_16, %c0_17] : memref<128x128xbf16, #tpu.memory_space<vmem>>, vector<128x128xbf16>
    tpu.vector_store %arg7[%c0_16, %c0_17], %25 {strides = array<i32>} : memref<128x128xbf16, #tpu.memory_space<vmem>>, vector<128x128xbf16>,
    return
  }
  func.func @transform_0(%arg0: i32) -> (i32, i32) {
    %c0_i32 = arith.constant 0 : i32
    %c0_i32_0 = arith.constant 0 : i32
    return %arg0, %c0_i32 : i32, i32
  }
  func.func @transform_1(%arg0: i32) -> (i32, i32) {
    %c0_i32 = arith.constant 0 : i32
    %c0_i32_0 = arith.constant 0 : i32
    return %arg0, %c0_i32 : i32, i32
  }
  func.func @transform_2(%arg0: i32) -> (i32, i32) {
    %c0_i32 = arith.constant 0 : i32
    %c0_i32_0 = arith.constant 0 : i32
    %c0_i32_1 = arith.constant 0 : i32
    return %c0_i32, %c0_i32_0 : i32, i32
  }
  func.func @transform_3(%arg0: i32) -> (i32, i32) {
    %c0_i32 = arith.constant 0 : i32
    %c0_i32_0 = arith.constant 0 : i32
    %c0_i32_1 = arith.constant 0 : i32
    return %c0_i32, %c0_i32_0 : i32, i32
  }
  func.func @transform_4(%arg0: i32) -> (i32, i32) {
    %c0_i32 = arith.constant 0 : i32
    %c0_i32_0 = arith.constant 0 : i32
    %c0_i32_1 = arith.constant 0 : i32
    return %c0_i32, %c0_i32_0 : i32, i32
  }
  func.func @transform_5(%arg0: i32) -> (i32, i32) {
    %c0_i32 = arith.constant 0 : i32
    %c0_i32_0 = arith.constant 0 : i32
    %c0_i32_1 = arith.constant 0 : i32
    return %c0_i32, %c0_i32_0 : i32, i32
  }
  func.func @transform_6(%arg0: i32) -> (i32, i32) {
    %c0_i32 = arith.constant 0 : i32
    %c0_i32_0 = arith.constant 0 : i32
    return %arg0, %c0_i32 : i32, i32
  }
}

module attributes {stable_mosaic.version = 11 : i64} {
  func.func @_scores_kernel(%arg0: i32, %arg1: i32, %arg2: memref<8x128xbf16, #tpu.memory_space<vmem>>, %arg3: memref<128x128xbf16, #tpu.memory_space<vmem>>, %arg4: memref<8x128xf32, #tpu.memory_space<vmem>>) attributes {dimension_semantics = [#tpu.dimension_semantics<parallel>, #tpu.dimension_semantics<parallel>], iteration_bounds = array<i64: 1, 1>, scalar_prefetch = 0 : i64, scratch_operands = 0 : i64, tpu.core_type = #tpu.core_type<tc>, window_params = [{transform_indices = @transform_0, window_bounds = array<i64: 8, 128>}, {transform_indices = @transform_1, window_bounds = array<i64: 128, 128>}, {transform_indices = @transform_2, window_bounds = array<i64: 8, 128>}]} {
    %c0 = arith.constant 0 : index
    %c0_0 = arith.constant 0 : index
    %0 = vector.load %arg2[%c0, %c0_0] : memref<8x128xbf16, #tpu.memory_space<vmem>>, vector<8x128xbf16>
    %c0_1 = arith.constant 0 : index
    %c0_2 = arith.constant 0 : index
    %1 = vector.load %arg3[%c0_1, %c0_2] : memref<128x128xbf16, #tpu.memory_space<vmem>>, vector<128x128xbf16>
    %cst = arith.constant dense<0.000000e+00> : vector<8x128xf32>
    %2 = tpu.matmul %0, %1, %cst {dimension_numbers = #tpu.dot_dimension_numbers<[1], [1], [0], [0], [0, 0, 1, 0], [], []>} : vector<8x128xbf16>, vector<128x128xbf16>, vector<8x128xf32> -> vector<8x128xf32>
    %c0_3 = arith.constant 0 : index
    %c0_4 = arith.constant 0 : index
    %3 = vector.load %arg4[%c0_3, %c0_4] : memref<8x128xf32, #tpu.memory_space<vmem>>, vector<8x128xf32>
    tpu.vector_store %arg4[%c0_3, %c0_4], %2 {strides = array<i32>} : memref<8x128xf32, #tpu.memory_space<vmem>>, vector<8x128xf32>,
    return
  }
  func.func @transform_0(%arg0: i32, %arg1: i32) -> (i32, i32) {
    %c0_i32 = arith.constant 0 : i32
    %c0_i32_0 = arith.constant 0 : i32
    return %arg0, %c0_i32 : i32, i32
  }
  func.func @transform_1(%arg0: i32, %arg1: i32) -> (i32, i32) {
    %c0_i32 = arith.constant 0 : i32
    %c0_i32_0 = arith.constant 0 : i32
    return %arg1, %c0_i32 : i32, i32
  }
  func.func @transform_2(%arg0: i32, %arg1: i32) -> (i32, i32) {
    %c0_i32 = arith.constant 0 : i32
    return %arg0, %arg1 : i32, i32
  }
}

module attributes {stable_mosaic.version = 11 : i64} {
  func.func @_encode_kernel(%arg0: i32, %arg1: memref<8x128xf32, #tpu.memory_space<vmem>>, %arg2: memref<8x128xf32, #tpu.memory_space<vmem>>, %arg3: memref<128x128xf32, #tpu.memory_space<vmem>>, %arg4: memref<1x128xf32, #tpu.memory_space<vmem>>, %arg5: memref<128x128xf32, #tpu.memory_space<vmem>>, %arg6: memref<1x128xf32, #tpu.memory_space<vmem>>, %arg7: memref<8x128xbf16, #tpu.memory_space<vmem>>) attributes {dimension_semantics = [#tpu.dimension_semantics<parallel>], iteration_bounds = array<i64: 1>, scalar_prefetch = 0 : i64, scratch_operands = 0 : i64, tpu.core_type = #tpu.core_type<tc>, window_params = [{transform_indices = @transform_0, window_bounds = array<i64: 8, 128>}, {transform_indices = @transform_1, window_bounds = array<i64: 8, 128>}, {pipeline_mode = #tpu.pipeline_mode<synchronous>, transform_indices = @transform_2, window_bounds = array<i64: 128, 128>}, {pipeline_mode = #tpu.pipeline_mode<synchronous>, transform_indices = @transform_3, window_bounds = array<i64: 1, 128>}, {pipeline_mode = #tpu.pipeline_mode<synchronous>, transform_indices = @transform_4, window_bounds = array<i64: 128, 128>}, {pipeline_mode = #tpu.pipeline_mode<synchronous>, transform_indices = @transform_5, window_bounds = array<i64: 1, 128>}, {transform_indices = @transform_6, window_bounds = array<i64: 8, 128>}]} {
    %c0 = arith.constant 0 : index
    %c0_0 = arith.constant 0 : index
    %0 = vector.load %arg2[%c0, %c0_0] : memref<8x128xf32, #tpu.memory_space<vmem>>, vector<8x128xf32>
    %c0_1 = arith.constant 0 : index
    %c0_2 = arith.constant 0 : index
    %1 = vector.load %arg3[%c0_1, %c0_2] : memref<128x128xf32, #tpu.memory_space<vmem>>, vector<128x128xf32>
    %cst = arith.constant dense<0.000000e+00> : vector<8x128xf32>
    %2 = tpu.matmul %0, %1, %cst {dimension_numbers = #tpu.dot_dimension_numbers<[1], [0], [0], [1], [0, 0, 1, 1], [], []>} : vector<8x128xf32>, vector<128x128xf32>, vector<8x128xf32> -> vector<8x128xf32>
    %c0_3 = arith.constant 0 : index
    %c0_4 = arith.constant 0 : index
    %3 = vector.load %arg4[%c0_3, %c0_4] : memref<1x128xf32, #tpu.memory_space<vmem>>, vector<1x128xf32>
    %4 = vector.broadcast %3 : vector<1x128xf32> to vector<8x128xf32>
    %5 = arith.addf %2, %4 : vector<8x128xf32>
    %c0_5 = arith.constant 0 : index
    %c0_6 = arith.constant 0 : index
    %6 = vector.load %arg1[%c0_5, %c0_6] : memref<8x128xf32, #tpu.memory_space<vmem>>, vector<8x128xf32>
    %cst_7 = arith.constant 0.000000e+00 : f32
    %7 = vector.broadcast %cst_7 : f32 to vector<8x128xf32>
    %8 = arith.maximumf %5, %7 : vector<8x128xf32>
    %9 = arith.addf %6, %8 : vector<8x128xf32>
    %c0_8 = arith.constant 0 : index
    %c0_9 = arith.constant 0 : index
    %10 = vector.load %arg5[%c0_8, %c0_9] : memref<128x128xf32, #tpu.memory_space<vmem>>, vector<128x128xf32>
    %cst_10 = arith.constant dense<0.000000e+00> : vector<8x128xf32>
    %11 = tpu.matmul %9, %10, %cst_10 {dimension_numbers = #tpu.dot_dimension_numbers<[1], [0], [0], [1], [0, 0, 1, 1], [], []>} : vector<8x128xf32>, vector<128x128xf32>, vector<8x128xf32> -> vector<8x128xf32>
    %c0_11 = arith.constant 0 : index
    %c0_12 = arith.constant 0 : index
    %12 = vector.load %arg6[%c0_11, %c0_12] : memref<1x128xf32, #tpu.memory_space<vmem>>, vector<1x128xf32>
    %13 = vector.broadcast %12 : vector<1x128xf32> to vector<8x128xf32>
    %14 = arith.addf %11, %13 : vector<8x128xf32>
    %15 = arith.mulf %14, %14 : vector<8x128xf32>
    %cst_13 = arith.constant dense<0.000000e+00> : vector<8xf32>
    %16 = vector.multi_reduction <add>, %15, %cst_13 [1] : vector<8x128xf32> to vector<8xf32>
    %17 = vector.shape_cast %16 : vector<8xf32> to vector<8x1xf32>
    %cst_14 = arith.constant 1.000000e-24 : f32
    %18 = vector.broadcast %cst_14 : f32 to vector<8x1xf32>
    %19 = arith.maximumf %17, %18 : vector<8x1xf32>
    %20 = math.rsqrt %19 : vector<8x1xf32>
    %cst_15 = arith.constant 1.000000e+01 : f32
    %21 = vector.broadcast %cst_15 : f32 to vector<8x1xf32>
    %22 = arith.mulf %20, %21 : vector<8x1xf32>
    %23 = vector.broadcast %22 : vector<8x1xf32> to vector<8x128xf32>
    %24 = arith.mulf %14, %23 : vector<8x128xf32>
    %25 = arith.truncf %24 : vector<8x128xf32> to vector<8x128xbf16>
    %c0_16 = arith.constant 0 : index
    %c0_17 = arith.constant 0 : index
    %26 = vector.load %arg7[%c0_16, %c0_17] : memref<8x128xbf16, #tpu.memory_space<vmem>>, vector<8x128xbf16>
    tpu.vector_store %arg7[%c0_16, %c0_17], %25 {strides = array<i32>} : memref<8x128xbf16, #tpu.memory_space<vmem>>, vector<8x128xbf16>,
    return
  }
  func.func @transform_0(%arg0: i32) -> (i32, i32) {
    %c0_i32 = arith.constant 0 : i32
    %c0_i32_0 = arith.constant 0 : i32
    return %arg0, %c0_i32 : i32, i32
  }
  func.func @transform_1(%arg0: i32) -> (i32, i32) {
    %c0_i32 = arith.constant 0 : i32
    %c0_i32_0 = arith.constant 0 : i32
    return %arg0, %c0_i32 : i32, i32
  }
  func.func @transform_2(%arg0: i32) -> (i32, i32) {
    %c0_i32 = arith.constant 0 : i32
    %c0_i32_0 = arith.constant 0 : i32
    %c0_i32_1 = arith.constant 0 : i32
    return %c0_i32, %c0_i32_0 : i32, i32
  }
  func.func @transform_3(%arg0: i32) -> (i32, i32) {
    %c0_i32 = arith.constant 0 : i32
    %c0_i32_0 = arith.constant 0 : i32
    %c0_i32_1 = arith.constant 0 : i32
    return %c0_i32, %c0_i32_0 : i32, i32
  }
  func.func @transform_4(%arg0: i32) -> (i32, i32) {
    %c0_i32 = arith.constant 0 : i32
    %c0_i32_0 = arith.constant 0 : i32
    %c0_i32_1 = arith.constant 0 : i32
    return %c0_i32, %c0_i32_0 : i32, i32
  }
  func.func @transform_5(%arg0: i32) -> (i32, i32) {
    %c0_i32 = arith.constant 0 : i32
    %c0_i32_0 = arith.constant 0 : i32
    %c0_i32_1 = arith.constant 0 : i32
    return %c0_i32, %c0_i32_0 : i32, i32
  }
  func.func @transform_6(%arg0: i32) -> (i32, i32) {
    %c0_i32 = arith.constant 0 : i32
    %c0_i32_0 = arith.constant 0 : i32
    return %arg0, %c0_i32 : i32, i32
  }
}

</mosaic_0001>

<bundles_post_ra>
// kernel: dual_encoder_forward.3
= control target key start
LH: loop header
LB: loop body
LE: loop exit
PB: predicated region body
PF: predicated region fallthrough
CT: control target
= control target key end

     0   :  { %11 = vsyncpa [#allocation3], 0  ;;  %s283_s0 = inlined_call_operand.vmem [shape: f32[8,128], index: 0, kind: input, shape index: {}]   ;;  %s284_s1 = inlined_call_operand.vmem [shape: f32[8,128], index: 1, kind: input, shape index: {}]   ;;  %s285_s2 = inlined_call_operand.hbm [shape: f32[128,128], index: 2, kind: input, shape index: {}]   ;;  %s286_s3 = inlined_call_operand.vmem [shape: f32[1,128], index: 3, kind: input, shape index: {}]   ;;  %s287_s4 = inlined_call_operand.hbm [shape: f32[128,128], index: 4, kind: input, shape index: {}]   ;;  %s288_s5 = inlined_call_operand.vmem [shape: f32[1,128], index: 5, kind: input, shape index: {}]   ;;  %s289_s6 = inlined_call_operand.vmem [shape: bf16[8,128], index: 6, kind: output, shape index: {}]  }
   0x1   :  { %s21_s23 = sshll.u32 %s285_s2, 4  ;;  %s22_s23 = int_to_ptr.hbm [resolvable:$true] %s21_s23 }
   0x2   :  { %12 = vsyncpa [#allocation5], 0  ;;  %s223_s24 = smov [#allocation2]   ;;  %s36_s28 = sshll.u32 %s287_s4, 4  ;;  %s37_s28 = int_to_ptr.hbm [resolvable:$true] %s36_s28 }
   0x3   :  { %s23_s25 = sshll.u32 %s223_s24, 4  ;;  %s224_s29 = smov 128   ;;  %s24_s25 = int_to_ptr.vmem [resolvable:$true] %s23_s25 }
   0x4   :  { %s225_s30 = smov 8   ;;  %s226_s7 = smov [#allocation4]  }
   0x5   :  { %29 = dma.hbm_to_vmem [thread:$0]  %s22_s23, 2048, %s24_s25, [#allocation3], %s224_s29, %s224_s29, %s225_s30  }
   0x6   :  { %s38_s8 = sshll.u32 %s226_s7, 4  ;;  %s39_s8 = int_to_ptr.vmem [resolvable:$true] %s38_s8 }
   0x7   :  { %44 = dma.hbm_to_vmem [thread:$0]  %s37_s28, 2048, %s39_s8, [#allocation5], %s224_s29, %s224_s29, %s225_s30  }
   0x8   :  { %219 = dma.done.wait [#allocation3], 2048  }
   0x9   :  { %220 = vsyncadd [#allocation3], 4294965248 }
   0xa   :  { %221 = dma.done.wait [#allocation5], 2048  }
   0xb   :  { %222 = vsyncadd [#allocation5], 4294965248  ;;  %v71_v0 = vld [vmem:[#allocation2 + $0x78] sm:$0xff]  ;;  %v70_v1 = vld [vmem:[#allocation2 + $0x70] sm:$0xff] }
   0xc   :  { %76 = vmatpush.msra.mxu0 %v71_v0  ;;  %v69_v2 = vld [vmem:[#allocation2 + $0x68] sm:$0xff]  ;;  %v68_v3 = vld [vmem:[#allocation2 + $0x60] sm:$0xff]  ;;  %v114_v4 = vld [vmem:[#allocation4 + $0x78] sm:$0xff] }
   0xd   :  { %v67_v5 = vld [vmem:[#allocation2 + $0x58] sm:$0xff]  ;;  %119 = vmatpush.msra.mxu1 %v114_v4  ;;  %v113_v6 = vld [vmem:[#allocation4 + $0x70] sm:$0xff]  ;;  %v112_v7 = vld [vmem:[#allocation4 + $0x68] sm:$0xff] }
   0xe   :  { %77 = vmatpush.msra.mxu0 %v70_v1  ;;  %v66_v8 = vld [vmem:[#allocation2 + $0x50] sm:$0xff]  ;;  %v111_v9 = vld [vmem:[#allocation4 + $0x60] sm:$0xff]  ;;  %v65_v10 = vld [vmem:[#allocation2 + $0x48] sm:$0xff] }
   0xf   :  { %120 = vmatpush.msra.mxu1 %v113_v6  ;;  %v110_v11 = vld [vmem:[#allocation4 + $0x58] sm:$0xff]  ;;  %v64_v12 = vld [vmem:[#allocation2 + $0x40] sm:$0xff]  ;;  %v109_v13 = vld [vmem:[#allocation4 + $0x50] sm:$0xff] }
  0x10   :  { %78 = vmatpush.msra.mxu0 %v69_v2  ;;  %v63_v14 = vld [vmem:[#allocation2 + $0x38] sm:$0xff]  ;;  %v108_v15 = vld [vmem:[#allocation4 + $0x48] sm:$0xff]  ;;  %v62_v16 = vld [vmem:[#allocation2 + $0x30] sm:$0xff] }
  0x11   :  { %121 = vmatpush.msra.mxu1 %v112_v7  ;;  %v107_v17 = vld [vmem:[#allocation4 + $0x40] sm:$0xff]  ;;  %v61_v18 = vld [vmem:[#allocation2 + $0x28] sm:$0xff]  ;;  %v106_v19 = vld [vmem:[#allocation4 + $0x38] sm:$0xff] }
  0x12   :  { %79 = vmatpush.msra.mxu0 %v68_v3  ;;  %v60_v20 = vld [vmem:[#allocation2 + $0x20] sm:$0xff]  ;;  %v105_v21 = vld [vmem:[#allocation4 + $0x30] sm:$0xff]  ;;  %v59_v22 = vld [vmem:[#allocation2 + $0x18] sm:$0xff] }
  0x13   :  { %122 = vmatpush.msra.mxu1 %v111_v9  ;;  %v104_v23 = vld [vmem:[#allocation4 + $0x28] sm:$0xff]  ;;  %v58_v24 = vld [vmem:[#allocation2 + $0x10] sm:$0xff]  ;;  %v103_v25 = vld [vmem:[#allocation4 + $0x20] sm:$0xff] }
  0x14   :  { %80 = vmatpush.msra.mxu0 %v67_v5  ;;  %v57_v26 = vld [vmem:[#allocation2 + $0x8] sm:$0xff]  ;;  %v56_v27 = vld [vmem:[#allocation2] sm:$0xff]  ;;  %v102_v29 = vld [vmem:[#allocation4 + $0x18] sm:$0xff] }
  0x15   :  { %123 = vmatpush.msra.mxu1 %v110_v11  ;;  %v55_v28 = vld [vmem:[%s284_s1] sm:$0xff]  ;;  %v101_v30 = vld [vmem:[#allocation4 + $0x10] sm:$0xff]  ;;  %v100_v31 = vld [vmem:[#allocation4 + $0x8] sm:$0xff] }
  0x16   :  { %81 = vmatpush.msra.mxu0 %v66_v8  ;;  %v99_v32 = vld [vmem:[#allocation4] sm:$0xff] }
  0x17   :  { %124 = vmatpush.msra.mxu1 %v109_v13  ;;  %v167_v33 = vld [vmem:[%s286_s3] ss:$0 sm:$0xff] }
  0x18   :  { %82 = vmatpush.msra.mxu0 %v65_v10  ;;  %v96_v36 = vld [vmem:[%s283_s0] sm:$0xff] }
  0x19   :  { %125 = vmatpush.msra.mxu1 %v108_v15  ;;  %v168_v39 = vld [vmem:[%s288_s5] ss:$0 sm:$0xff] }
  0x1a   :  { %83 = vmatpush.msra.mxu0 %v64_v12 }
  0x1b   :  { %126 = vmatpush.msra.mxu1 %v107_v17 }
  0x1c   :  { %84 = vmatpush.msra.mxu0 %v63_v14 }
  0x1d   :  { %127 = vmatpush.msra.mxu1 %v106_v19 }
  0x1e   :  { %85 = vmatpush.msra.mxu0 %v62_v16 }
  0x1f   :  { %128 = vmatpush.msra.mxu1 %v105_v21 }
  0x20   :  { %86 = vmatpush.msra.mxu0 %v61_v18 }
  0x21   :  { %129 = vmatpush.msra.mxu1 %v104_v23 }
  0x22   :  { %87 = vmatpush.msra.mxu0 %v60_v20 }
  0x23   :  { %130 = vmatpush.msra.mxu1 %v103_v25 }
  0x24   :  { %88 = vmatpush.msra.mxu0 %v59_v22 }
  0x25   :  { %131 = vmatpush.msra.mxu1 %v102_v29 }
  0x26   :  { %89 = vmatpush.msra.mxu0 %v58_v24 }
  0x27   :  { %132 = vmatpush.msra.mxu1 %v101_v30 }
  0x28   :  { %90 = vmatpush.msra.mxu0 %v57_v26 }
  0x29   :  { %133 = vmatpush.msra.mxu1 %v100_v31 }
  0x2a   :  { %91 = vmatpush.msra.mxu0 %v56_v27 }
  0x2b   :  { %92 = vmatmul.f32.vlgmr.msra.gmra.mxu0 %v55_v28  ;;  %134 = vmatpush.msra.mxu1 %v99_v32 }
  0xa8   :  { %v93_v34 = vpop.f32.mrf.mxu0 }
  0xa9   :  { %v94_v35 = vadd.f32 %v167_v33, %v93_v34 }
  0xab   :  { %v97_v37 = vmax.f32 %v94_v35, 0.0 }
  0xad   :  { %v98_v38 = vadd.f32 %v97_v37, %v96_v36 }
  0xaf   :  { %135 = vmatmul.f32.vlgmr.msra.gmra.mxu1 %v98_v38 }
 0x12c   :  { %v136_v40 = vpop.f32.mrf.mxu1 }
 0x12d   :  { %v137_v41 = vadd.f32 %v168_v39, %v136_v40 }
 0x12f   :  { %v139_v42 = vmul.f32 %v137_v41, %v137_v41 }
 0x131   :  { %140 = vadd.xlane.f32.xlu0 %v139_v42 }
 0x1a4   :  { %v141_v43 = vpop.xlane.xlu0 %140 }
 0x1a5   :  { %v142_v44 = vmax.f32 %v141_v43, 1e-24 }
 0x1a7   :  { %169 = vrsqrt.f32 %v142_v44  ;;  %vm149_vm1 = vweird.f32 %v142_v44 }
 0x1ad   :  { %v170_v45 = vpop.eup %169 }
 0x1ae   :  { %v144_v46 = vmul.f32 %v170_v45, %v142_v44  ;;  %vm150_vm0 = vweird.f32 %v170_v45 }
 0x1af   :  { %vm151_vm2 = vmor %vm149_vm1, %vm150_vm0 }
 0x1b0   :  { %v145_v47 = vmul.f32 %v170_v45, %v144_v46 }
 0x1b2   :  { %v146_v48 = vmul.f32 0.5, %v145_v47 }
 0x1b4   :  { %v147_v49 = vsub.f32 1.5, %v146_v48 }
 0x1b6   :  { %v148_v50 = vmul.f32 %v170_v45, %v147_v49 }
 0x1b8   :  { %v152_v51 = vsel %vm151_vm2, %v170_v45, %v148_v50 }
 0x1b9   :  { %v153_v52 = vmul.f32 10.0, %v152_v51 }
 0x1bb   :  { %v154_v53 = vmul.f32 %v153_v52, %v137_v41 }
 0x1bd   :  { %v155_v54 = vpack.c.bf16 %v154_v53, %v154_v53 }
 0x1bf   :  { %156 = vst [vmem:[%s289_s6] sm:$0xf] %v155_v54 }
 0x1c0   :  { %161 = vsyncpa [#allocation3], 1 }
 0x1c1   :  { %162 = vsyncpa [#allocation5], 1 }

// kernel: dual_encoder_forward.5
= control target key start
LH: loop header
LB: loop body
LE: loop exit
PB: predicated region body
PF: predicated region fallthrough
CT: control target
= control target key end

     0   :  { %s179_s1 = inlined_call_operand.vmem [shape: bf16[128,128], index: 1, kind: input, shape index: {}]   ;;  %s180_s0 = inlined_call_operand.vmem [shape: bf16[8,128], index: 0, kind: input, shape index: {}]   ;;  %s181_s2 = inlined_call_operand.vmem [shape: f32[8,128], index: 2, kind: output, shape index: {}]  }
   0x1   :  { %v133_v0 = vld [vmem:[%s179_s1 + $0x38] sm:$0xff]  ;;  %v132_v1 = vld [vmem:[%s179_s1 + $0x30] sm:$0xff]  ;;  %v131_v2 = vld [vmem:[%s179_s1 + $0x28] sm:$0xff] }
   0x2   :  { %76 = vmatpush.bf16.xpose.msra.mxu0 %v133_v0  ;;  %v130_v3 = vld [vmem:[%s179_s1 + $0x20] sm:$0xff]  ;;  %v129_v4 = vld [vmem:[%s179_s1 + $0x18] sm:$0xff]  ;;  %v128_v5 = vld [vmem:[%s179_s1 + $0x10] sm:$0xff] }
   0x3   :  { %v127_v6 = vld [vmem:[%s179_s1 + $0x8] sm:$0xff]  ;;  %v126_v7 = vld [vmem:[%s179_s1] sm:$0xff] }
   0x4   :  { %v11_v8 = vld [vmem:[%s180_s0] sm:$0xf] }
   0xa   :  { %77 = vmatpush.bf16.xpose.msra.mxu0 %v132_v1 }
  0x12   :  { %78 = vmatpush.bf16.xpose.msra.mxu0 %v131_v2 }
  0x1a   :  { %79 = vmatpush.bf16.xpose.msra.mxu0 %v130_v3 }
  0x22   :  { %80 = vmatpush.bf16.xpose.msra.mxu0 %v129_v4 }
  0x2a   :  { %81 = vmatpush.bf16.xpose.msra.mxu0 %v128_v5 }
  0x32   :  { %82 = vmatpush.bf16.xpose.msra.mxu0 %v127_v6 }
  0x3a   :  { %83 = vmatpush.bf16.xpose.msra.mxu0 %v126_v7 }
  0x41   :  { %84 = vmatmul.bf16.vlgmr.msra.gmra.mxu0 %v11_v8 }
  0xbe   :  { %v85_v9 = vpop.f32.mrf.mxu0 }
  0xbf   :  { %89 = vst [vmem:[%s181_s2] sm:$0xff] %v85_v9 }
  0xc6   :  { %v87_v10 = vpop.f32.mrf.mxu0 }

// kernel: dual_encoder_forward.4
= control target key start
LH: loop header
LB: loop body
LE: loop exit
PB: predicated region body
PF: predicated region fallthrough
CT: control target
= control target key end

     0   :  { %s1090_s2 = inlined_call_operand.vmem [shape: f32[128,128], index: 2, kind: input, shape index: {}]   ;;  %s1091_s3 = inlined_call_operand.vmem [shape: f32[1,128], index: 3, kind: input, shape index: {}]   ;;  %s1092_s1 = inlined_call_operand.vmem [shape: f32[128,128], index: 1, kind: input, shape index: {}]   ;;  %s1093_s4 = inlined_call_operand.vmem [shape: f32[128,128], index: 4, kind: input, shape index: {}]   ;;  %s1094_s5 = inlined_call_operand.vmem [shape: f32[1,128], index: 5, kind: input, shape index: {}]   ;;  %s1095_s0 = inlined_call_operand.vmem [shape: f32[128,128], index: 0, kind: input, shape index: {}]   ;;  %s1096_s6 = inlined_call_operand.vmem [shape: bf16[128,128], index: 6, kind: output, shape index: {}]  }
   0x1   :  { %v54_v0 = vld [vmem:[%s1090_s2 + $0x78] sm:$0xff]  ;;  %v53_v1 = vld [vmem:[%s1090_s2 + $0x70] sm:$0xff]  ;;  %v52_v2 = vld [vmem:[%s1090_s2 + $0x68] sm:$0xff] }
   0x2   :  { %59 = vmatpush.msra.mxu0 %v54_v0  ;;  %580 = vmatpush.msra.mxu2 %v54_v0  ;;  %v51_v3 = vld [vmem:[%s1090_s2 + $0x60] sm:$0xff]  ;;  %v50_v4 = vld [vmem:[%s1090_s2 + $0x58] sm:$0xff]  ;;  %v49_v5 = vld [vmem:[%s1090_s2 + $0x50] sm:$0xff] }
   0x3   :  { %v48_v6 = vld [vmem:[%s1090_s2 + $0x48] sm:$0xff]  ;;  %v47_v7 = vld [vmem:[%s1090_s2 + $0x40] sm:$0xff]  ;;  %v46_v8 = vld [vmem:[%s1090_s2 + $0x38] sm:$0xff] }
   0x4   :  { %60 = vmatpush.msra.mxu0 %v53_v1  ;;  %581 = vmatpush.msra.mxu2 %v53_v1  ;;  %v45_v9 = vld [vmem:[%s1090_s2 + $0x30] sm:$0xff]  ;;  %v44_v10 = vld [vmem:[%s1090_s2 + $0x28] sm:$0xff]  ;;  %v43_v11 = vld [vmem:[%s1090_s2 + $0x20] sm:$0xff] }
   0x5   :  { %v42_v12 = vld [vmem:[%s1090_s2 + $0x18] sm:$0xff]  ;;  %v41_v13 = vld [vmem:[%s1090_s2 + $0x10] sm:$0xff]  ;;  %v40_v14 = vld [vmem:[%s1090_s2 + $0x8] sm:$0xff] }
   0x6   :  { %61 = vmatpush.msra.mxu0 %v52_v2  ;;  %582 = vmatpush.msra.mxu2 %v52_v2  ;;  %v39_v15 = vld [vmem:[%s1090_s2] sm:$0xff]  ;;  %v24_v18 = vld [vmem:[%s1092_s1 + $0x8] sm:$0xff]  ;;  %v25_v20 = vld [vmem:[%s1092_s1 + $0x10] sm:$0xff] }
   0x7   :  { %v23_v16 = vld [vmem:[%s1092_s1] sm:$0xff]  ;;  %v32_v19 = vld [vmem:[%s1092_s1 + $0x48] sm:$0xff]  ;;  %v33_v21 = vld [vmem:[%s1092_s1 + $0x50] sm:$0xff] }
   0x8   :  { %62 = vmatpush.msra.mxu0 %v51_v3  ;;  %583 = vmatpush.msra.mxu2 %v51_v3  ;;  %v31_v17 = vld [vmem:[%s1092_s1 + $0x40] sm:$0xff]  ;;  %v26_v22 = vld [vmem:[%s1092_s1 + $0x18] sm:$0xff]  ;;  %v186_v25 = vld [vmem:[%s1093_s4 + $0x70] sm:$0xff] }
   0x9   :  { %v34_v23 = vld [vmem:[%s1092_s1 + $0x58] sm:$0xff]  ;;  %v185_v26 = vld [vmem:[%s1093_s4 + $0x68] sm:$0xff]  ;;  %v184_v27 = vld [vmem:[%s1093_s4 + $0x60] sm:$0xff] }
   0xa   :  { %63 = vmatpush.msra.mxu0 %v50_v4  ;;  %584 = vmatpush.msra.mxu2 %v50_v4  ;;  %v187_v24 = vld [vmem:[%s1093_s4 + $0x78] sm:$0xff]  ;;  %v27_v28 = vld [vmem:[%s1092_s1 + $0x20] sm:$0xff]  ;;  %v182_v31 = vld [vmem:[%s1093_s4 + $0x50] sm:$0xff] }
   0xb   :  { %192 = vmatpush.msra.mxu1 %v187_v24  ;;  %596 = vmatpush.msra.mxu3 %v187_v24  ;;  %v35_v29 = vld [vmem:[%s1092_s1 + $0x60] sm:$0xff]  ;;  %v183_v30 = vld [vmem:[%s1093_s4 + $0x58] sm:$0xff]  ;;  %v181_v32 = vld [vmem:[%s1093_s4 + $0x48] sm:$0xff] }
   0xc   :  { %64 = vmatpush.msra.mxu0 %v49_v5  ;;  %585 = vmatpush.msra.mxu2 %v49_v5  ;;  %v180_v33 = vld [vmem:[%s1093_s4 + $0x40] sm:$0xff]  ;;  %v28_v34 = vld [vmem:[%s1092_s1 + $0x28] sm:$0xff]  ;;  %v179_v36 = vld [vmem:[%s1093_s4 + $0x38] sm:$0xff] }
   0xd   :  { %193 = vmatpush.msra.mxu1 %v186_v25  ;;  %597 = vmatpush.msra.mxu3 %v186_v25  ;;  %v36_v35 = vld [vmem:[%s1092_s1 + $0x68] sm:$0xff]  ;;  %v178_v37 = vld [vmem:[%s1093_s4 + $0x30] sm:$0xff]  ;;  %v176_v39 = vld [vmem:[%s1093_s4 + $0x20] sm:$0xff] }
   0xe   :  { %65 = vmatpush.msra.mxu0 %v48_v6  ;;  %586 = vmatpush.msra.mxu2 %v48_v6  ;;  %v177_v38 = vld [vmem:[%s1093_s4 + $0x28] sm:$0xff]  ;;  %v29_v40 = vld [vmem:[%s1092_s1 + $0x30] sm:$0xff]  ;;  %v30_v42 = vld [vmem:[%s1092_s1 + $0x38] sm:$0xff] }
   0xf   :  { %194 = vmatpush.msra.mxu1 %v185_v26  ;;  %598 = vmatpush.msra.mxu3 %v185_v26  ;;  %v37_v41 = vld [vmem:[%s1092_s1 + $0x70] sm:$0xff]  ;;  %v38_v43 = vld [vmem:[%s1092_s1 + $0x78] sm:$0xff]  ;;  %v173_v46 = vld [vmem:[%s1093_s4 + $0x8] sm:$0xff] }
  0x10   :  { %66 = vmatpush.msra.mxu0 %v47_v7  ;;  %587 = vmatpush.msra.mxu2 %v47_v7  ;;  %v175_v44 = vld [vmem:[%s1093_s4 + $0x18] sm:$0xff]  ;;  %v174_v45 = vld [vmem:[%s1093_s4 + $0x10] sm:$0xff]  ;;  %v172_v47 = vld [vmem:[%s1093_s4] sm:$0xff] }
  0x11   :  { %195 = vmatpush.msra.mxu1 %v184_v27  ;;  %599 = vmatpush.msra.mxu3 %v184_v27  ;;  %v828_v48 = vld [vmem:[%s1091_s3] ss:$0 sm:$0xff]  ;;  %v125_v60 = vld [vmem:[%s1095_s0 + $0x8] sm:$0xff]  ;;  %v126_v6 = vld [vmem:[%s1095_s0 + $0x10] sm:$0xff] }
  0x12   :  { %67 = vmatpush.msra.mxu0 %v46_v8  ;;  %588 = vmatpush.msra.mxu2 %v46_v8  ;;  %v124_v51 = vld [vmem:[%s1095_s0] sm:$0xff]  ;;  %v133_v3 = vld [vmem:[%s1095_s0 + $0x48] sm:$0xff] }
  0x13   :  { %196 = vmatpush.msra.mxu1 %v183_v30  ;;  %600 = vmatpush.msra.mxu3 %v183_v30  ;;  %v132_v57 = vld [vmem:[%s1095_s0 + $0x40] sm:$0xff] }
  0x14   :  { %68 = vmatpush.msra.mxu0 %v45_v9  ;;  %589 = vmatpush.msra.mxu2 %v45_v9  ;;  %v128_v26 = vld [vmem:[%s1095_s0 + $0x20] sm:$0xff] }
  0x15   :  { %197 = vmatpush.msra.mxu1 %v182_v31  ;;  %601 = vmatpush.msra.mxu3 %v182_v31 }
  0x16   :  { %69 = vmatpush.msra.mxu0 %v44_v10  ;;  %590 = vmatpush.msra.mxu2 %v44_v10 }
  0x17   :  { %198 = vmatpush.msra.mxu1 %v181_v32  ;;  %602 = vmatpush.msra.mxu3 %v181_v32 }
  0x18   :  { %70 = vmatpush.msra.mxu0 %v43_v11  ;;  %591 = vmatpush.msra.mxu2 %v43_v11 }
  0x19   :  { %199 = vmatpush.msra.mxu1 %v180_v33  ;;  %603 = vmatpush.msra.mxu3 %v180_v33  ;;  %v136_v33 = vld [vmem:[%s1095_s0 + $0x60] sm:$0xff] }
  0x1a   :  { %71 = vmatpush.msra.mxu0 %v42_v12  ;;  %592 = vmatpush.msra.mxu2 %v42_v12 }
  0x1b   :  { %200 = vmatpush.msra.mxu1 %v179_v36  ;;  %604 = vmatpush.msra.mxu3 %v179_v36  ;;  %v129_v36 = vld [vmem:[%s1095_s0 + $0x28] sm:$0xff] }
  0x1c   :  { %72 = vmatpush.msra.mxu0 %v41_v13  ;;  %593 = vmatpush.msra.mxu2 %v41_v13  ;;  %v134_v13 = vld [vmem:[%s1095_s0 + $0x50] sm:$0xff] }
  0x1d   :  { %201 = vmatpush.msra.mxu1 %v178_v37  ;;  %605 = vmatpush.msra.mxu3 %v178_v37 }
  0x1e   :  { %73 = vmatpush.msra.mxu0 %v40_v14  ;;  %594 = vmatpush.msra.mxu2 %v40_v14 }
  0x1f   :  { %202 = vmatpush.msra.mxu1 %v177_v38  ;;  %606 = vmatpush.msra.mxu3 %v177_v38 }
  0x20   :  { %74 = vmatpush.msra.mxu0 %v39_v15  ;;  %595 = vmatpush.msra.mxu2 %v39_v15 }
  0x21   :  { %75 = vmatmul.f32.vlgmr.msra.gmra.mxu0 %v23_v16  ;;  %99 = vmatmul.f32.vlgmr.msra.gmra.mxu2 %v31_v17  ;;  %v127_v16 = vld [vmem:[%s1095_s0 + $0x18] sm:$0xff] }
  0x22   :  { %203 = vmatpush.msra.mxu1 %v176_v39  ;;  %607 = vmatpush.msra.mxu3 %v176_v39 }
  0x24   :  { %204 = vmatpush.msra.mxu1 %v175_v44  ;;  %608 = vmatpush.msra.mxu3 %v175_v44 }
  0x26   :  { %205 = vmatpush.msra.mxu1 %v174_v45  ;;  %609 = vmatpush.msra.mxu3 %v174_v45 }
  0x28   :  { %206 = vmatpush.msra.mxu1 %v173_v46  ;;  %610 = vmatpush.msra.mxu3 %v173_v46  ;;  %v130_v46 = vld [vmem:[%s1095_s0 + $0x30] sm:$0xff] }
  0x29   :  { %78 = vmatmul.f32.gmra.mxu0 %v24_v18  ;;  %102 = vmatmul.f32.gmra.mxu2 %v32_v19 }
  0x2a   :  { %207 = vmatpush.msra.mxu1 %v172_v47  ;;  %611 = vmatpush.msra.mxu3 %v172_v47 }
  0x31   :  { %81 = vmatmul.f32.gmra.mxu0 %v25_v20  ;;  %105 = vmatmul.f32.gmra.mxu2 %v33_v21 }
  0x39   :  { %84 = vmatmul.f32.gmra.mxu0 %v26_v22  ;;  %108 = vmatmul.f32.gmra.mxu2 %v34_v23  ;;  %v135_v23 = vld [vmem:[%s1095_s0 + $0x58] sm:$0xff] }
  0x41   :  { %87 = vmatmul.f32.gmra.mxu0 %v27_v28  ;;  %111 = vmatmul.f32.gmra.mxu2 %v35_v29 }
  0x49   :  { %90 = vmatmul.f32.gmra.mxu0 %v28_v34  ;;  %114 = vmatmul.f32.gmra.mxu2 %v36_v35 }
  0x51   :  { %93 = vmatmul.f32.gmra.mxu0 %v29_v40  ;;  %117 = vmatmul.f32.gmra.mxu2 %v37_v41 }
  0x59   :  { %96 = vmatmul.f32.gmra.mxu0 %v30_v42  ;;  %120 = vmatmul.f32.gmra.mxu2 %v38_v43  ;;  %v137_v43 = vld [vmem:[%s1095_s0 + $0x68] sm:$0xff] }
  0x9e   :  { %v76_v49 = vpop.f32.mrf.mxu0 }
  0x9f   :  { %v77_v50 = vadd.f32 %v828_v48, %v76_v49 }
  0xa1   :  { %v140_v52 = vmax.f32 %v77_v50, 0.0 }
  0xa3   :  { %v156_v53 = vadd.f32 %v140_v52, %v124_v51 }
  0xa4   :  { %v100_v54 = vpop.f32.mrf.mxu2 }
  0xa5   :  { %v101_v55 = vadd.f32 %v828_v48, %v100_v54  ;;  %208 = vmatmul.f32.vlgmr.msra.gmra.mxu1 %v156_v53  ;;  %v138_v54 = vld [vmem:[%s1095_s0 + $0x70] sm:$0xff] }
  0xa6   :  { %v79_v56 = vpop.f32.mrf.mxu0 }
  0xa7   :  { %v148_v58 = vmax.f32 %v101_v55, 0.0  ;;  %v80_v59 = vadd.f32 %v828_v48, %v79_v56 }
  0xa9   :  { %v141_v61 = vmax.f32 %v80_v59, 0.0  ;;  %v164_v62 = vadd.f32 %v148_v58, %v132_v57  ;;  %v131_v57 = vld [vmem:[%s1095_s0 + $0x38] sm:$0xff] }
  0xab   :  { %232 = vmatmul.f32.vlgmr.msra.gmra.mxu3 %v164_v62  ;;  %v157_v63 = vadd.f32 %v141_v61, %v125_v60 }
  0xac   :  { %v103_v0 = vpop.f32.mrf.mxu2 }
  0xad   :  { %v104_v1 = vadd.f32 %v828_v48, %v103_v0  ;;  %211 = vmatmul.f32.gmra.mxu1 %v157_v63  ;;  %v139_v63 = vld [vmem:[%s1095_s0 + $0x78] sm:$0xff] }
  0xae   :  { %v82_v2 = vpop.f32.mrf.mxu0 }
  0xaf   :  { %v149_v4 = vmax.f32 %v104_v1, 0.0  ;;  %v83_v5 = vadd.f32 %v828_v48, %v82_v2  ;;  %v613_v2 = vld [vmem:[%s1094_s5] ss:$0 sm:$0xff] }
  0xb1   :  { %v142_v7 = vmax.f32 %v83_v5, 0.0  ;;  %v165_v8 = vadd.f32 %v149_v4, %v133_v3 }
  0xb3   :  { %235 = vmatmul.f32.gmra.mxu3 %v165_v8  ;;  %v158_v9 = vadd.f32 %v142_v7, %v126_v6 }
  0xb4   :  { %v106_v10 = vpop.f32.mrf.mxu2 }
  0xb5   :  { %v107_v11 = vadd.f32 %v828_v48, %v106_v10  ;;  %214 = vmatmul.f32.gmra.mxu1 %v158_v9 }
  0xb6   :  { %v85_v12 = vpop.f32.mrf.mxu0 }
  0xb7   :  { %v150_v14 = vmax.f32 %v107_v11, 0.0  ;;  %v86_v15 = vadd.f32 %v828_v48, %v85_v12 }
  0xb9   :  { %v143_v17 = vmax.f32 %v86_v15, 0.0  ;;  %v166_v18 = vadd.f32 %v150_v14, %v134_v13 }
  0xbb   :  { %238 = vmatmul.f32.gmra.mxu3 %v166_v18  ;;  %v159_v19 = vadd.f32 %v143_v17, %v127_v16 }
  0xbc   :  { %v109_v20 = vpop.f32.mrf.mxu2 }
  0xbd   :  { %v110_v21 = vadd.f32 %v828_v48, %v109_v20  ;;  %217 = vmatmul.f32.gmra.mxu1 %v159_v19 }
  0xbe   :  { %v88_v22 = vpop.f32.mrf.mxu0 }
  0xbf   :  { %v151_v24 = vmax.f32 %v110_v21, 0.0  ;;  %v89_v25 = vadd.f32 %v828_v48, %v88_v22 }
  0xc1   :  { %v144_v27 = vmax.f32 %v89_v25, 0.0  ;;  %v167_v28 = vadd.f32 %v151_v24, %v135_v23 }
  0xc3   :  { %241 = vmatmul.f32.gmra.mxu3 %v167_v28  ;;  %v160_v29 = vadd.f32 %v144_v27, %v128_v26 }
  0xc4   :  { %v112_v30 = vpop.f32.mrf.mxu2 }
  0xc5   :  { %v113_v31 = vadd.f32 %v828_v48, %v112_v30  ;;  %220 = vmatmul.f32.gmra.mxu1 %v160_v29 }
  0xc6   :  { %v91_v32 = vpop.f32.mrf.mxu0 }
  0xc7   :  { %v152_v34 = vmax.f32 %v113_v31, 0.0  ;;  %v92_v35 = vadd.f32 %v828_v48, %v91_v32 }
  0xc9   :  { %v145_v37 = vmax.f32 %v92_v35, 0.0  ;;  %v168_v38 = vadd.f32 %v152_v34, %v136_v33 }
  0xcb   :  { %244 = vmatmul.f32.gmra.mxu3 %v168_v38  ;;  %v161_v39 = vadd.f32 %v145_v37, %v129_v36 }
  0xcc   :  { %v115_v40 = vpop.f32.mrf.mxu2 }
  0xcd   :  { %v116_v41 = vadd.f32 %v828_v48, %v115_v40  ;;  %223 = vmatmul.f32.gmra.mxu1 %v161_v39 }
  0xce   :  { %v94_v42 = vpop.f32.mrf.mxu0 }
  0xcf   :  { %v153_v44 = vmax.f32 %v116_v41, 0.0  ;;  %v95_v45 = vadd.f32 %v828_v48, %v94_v42 }
  0xd1   :  { %v146_v47 = vmax.f32 %v95_v45, 0.0  ;;  %v169_v49 = vadd.f32 %v153_v44, %v137_v43 }
  0xd3   :  { %247 = vmatmul.f32.gmra.mxu3 %v169_v49  ;;  %v162_v50 = vadd.f32 %v146_v47, %v130_v46 }
  0xd4   :  { %v118_v51 = vpop.f32.mrf.mxu2 }
  0xd5   :  { %v119_v52 = vadd.f32 %v828_v48, %v118_v51  ;;  %226 = vmatmul.f32.gmra.mxu1 %v162_v50 }
  0xd6   :  { %v97_v53 = vpop.f32.mrf.mxu0 }
  0xd7   :  { %v154_v55 = vmax.f32 %v119_v52, 0.0  ;;  %v98_v56 = vadd.f32 %v828_v48, %v97_v53 }
  0xd9   :  { %v147_v58 = vmax.f32 %v98_v56, 0.0  ;;  %v170_v59 = vadd.f32 %v154_v55, %v138_v54 }
  0xdb   :  { %250 = vmatmul.f32.gmra.mxu3 %v170_v59  ;;  %v163_v60 = vadd.f32 %v147_v58, %v131_v57 }
  0xdc   :  { %v121_v61 = vpop.f32.mrf.mxu2 }
  0xdd   :  { %v122_v62 = vadd.f32 %v828_v48, %v121_v61  ;;  %229 = vmatmul.f32.gmra.mxu1 %v163_v60 }
  0xdf   :  { %v155_v0 = vmax.f32 %v122_v62, 0.0 }
  0xe1   :  { %v171_v1 = vadd.f32 %v155_v0, %v139_v63 }
  0xe3   :  { %253 = vmatmul.f32.gmra.mxu3 %v171_v1 }
 0x122   :  { %v209_v3 = vpop.f32.mrf.mxu1 }
 0x123   :  { %v897_v4 = vadd.f32 %v613_v2, %v209_v3 }
 0x125   :  { %v257_v5 = vmul.f32 %v897_v4, %v897_v4 }
 0x127   :  { %273 = vadd.xlane.f32.xlu0 %v257_v5 }
 0x12a   :  { %v212_v48 = vpop.f32.mrf.mxu1 }
 0x12b   :  { %v901_v6 = vadd.f32 %v613_v2, %v212_v48 }
 0x12d   :  { %v258_v7 = vmul.f32 %v901_v6, %v901_v6 }
 0x12e   :  { %v233_v8 = vpop.f32.mrf.mxu3 }
 0x12f   :  { %v905_v9 = vadd.f32 %v613_v2, %v233_v8  ;;  %275 = vadd.xlane.f32.xlu0 %v258_v7 }
 0x131   :  { %v265_v10 = vmul.f32 %v905_v9, %v905_v9 }
 0x132   :  { %v215_v11 = vpop.f32.mrf.mxu1 }
 0x133   :  { %v909_v12 = vadd.f32 %v613_v2, %v215_v11  ;;  %289 = vadd.xlane.f32.xlu2 %v265_v10 }
 0x135   :  { %v259_v13 = vmul.f32 %v909_v12, %v909_v12 }
 0x136   :  { %v236_v14 = vpop.f32.mrf.mxu3 }
 0x137   :  { %v913_v15 = vadd.f32 %v613_v2, %v236_v14  ;;  %277 = vadd.xlane.f32.xlu1 %v259_v13 }
 0x139   :  { %v266_v16 = vmul.f32 %v913_v15, %v913_v15 }
 0x13a   :  { %v218_v17 = vpop.f32.mrf.mxu1 }
 0x13b   :  { %v917_v18 = vadd.f32 %v613_v2, %v218_v17  ;;  %291 = vadd.xlane.f32.xlu0 %v266_v16 }
 0x13d   :  { %v260_v19 = vmul.f32 %v917_v18, %v917_v18 }
 0x13e   :  { %v239_v20 = vpop.f32.mrf.mxu3 }
 0x13f   :  { %279 = vadd.xlane.f32.xlu1 %v260_v19  ;;  %v921_v21 = vadd.f32 %v613_v2, %v239_v20 }
 0x141   :  { %v267_v25 = vmul.f32 %v921_v21, %v921_v21 }
 0x142   :  { %v221_v22 = vpop.f32.mrf.mxu1 }
 0x143   :  { %v923_v23 = vadd.f32 %v613_v2, %v221_v22 }
 0x145   :  { %v261_v24 = vmul.f32 %v923_v23, %v923_v23 }
 0x146   :  { %v242_v26 = vpop.f32.mrf.mxu3 }
 0x147   :  { %281 = vadd.xlane.f32.xlu2 %v261_v24  ;;  %293 = vadd.xlane.f32.xlu1 %v267_v25  ;;  %v929_v27 = vadd.f32 %v613_v2, %v242_v26 }
 0x149   :  { %v268_v29 = vmul.f32 %v929_v27, %v929_v27 }
 0x14a   :  { %v224_v28 = vpop.f32.mrf.mxu1 }
 0x14b   :  { %v935_v32 = vadd.f32 %v613_v2, %v224_v28 }
 0x14d   :  { %v262_v36 = vmul.f32 %v935_v32, %v935_v32 }
 0x14e   :  { %v245_v30 = vpop.f32.mrf.mxu3 }
 0x14f   :  { %v933_v31 = vadd.f32 %v613_v2, %v245_v30  ;;  %295 = vadd.xlane.f32.xlu2 %v268_v29 }
 0x151   :  { %v269_v33 = vmul.f32 %v933_v31, %v933_v31 }
 0x152   :  { %v227_v34 = vpop.f32.mrf.mxu1 }
 0x153   :  { %v939_v35 = vadd.f32 %v613_v2, %v227_v34  ;;  %297 = vadd.xlane.f32.xlu0 %v269_v33 }
 0x155   :  { %v263_v38 = vmul.f32 %v939_v35, %v939_v35 }
 0x156   :  { %v248_v37 = vpop.f32.mrf.mxu3 }
 0x157   :  { %283 = vadd.xlane.f32.xlu2 %v262_v36  ;;  %v951_v44 = vadd.f32 %v613_v2, %v248_v37 }
 0x159   :  { %v270_v46 = vmul.f32 %v951_v44, %v951_v44 }
 0x15a   :  { %v230_v39 = vpop.f32.mrf.mxu1 }
 0x15b   :  { %v945_v40 = vadd.f32 %v613_v2, %v230_v39  ;;  %285 = vadd.xlane.f32.xlu0 %v263_v38 }
 0x15d   :  { %v264_v41 = vmul.f32 %v945_v40, %v945_v40 }
 0x15e   :  { %v251_v42 = vpop.f32.mrf.mxu3 }
 0x15f   :  { %v949_v43 = vadd.f32 %v613_v2, %v251_v42  ;;  %287 = vadd.xlane.f32.xlu1 %v264_v41 }
 0x161   :  { %v271_v45 = vmul.f32 %v949_v43, %v949_v43 }
 0x163   :  { %301 = vadd.xlane.f32.xlu2 %v271_v45 }
 0x166   :  { %v254_v47 = vpop.f32.mrf.mxu3 }
 0x167   :  { %v957_v49 = vadd.f32 %v613_v2, %v254_v47  ;;  %299 = vadd.xlane.f32.xlu1 %v270_v46 }
 0x169   :  { %v272_v50 = vmul.f32 %v957_v49, %v957_v49 }
 0x16b   :  { %303 = vadd.xlane.f32.xlu0 %v272_v50 }
 0x19a   :  { %v274_v51 = vpop.xlane.xlu0 %273 }
 0x19b   :  { %v305_v52 = vmax.f32 %v274_v51, 1e-24 }
 0x19d   :  { %614 = vrsqrt.f32 %v305_v52  ;;  %vm327_vm1 = vweird.f32 %v305_v52 }
 0x1a2   :  { %v276_v53 = vpop.xlane.xlu0 %275 }
 0x1a3   :  { %v615_v54 = vpop.eup %614  ;;  %v306_v55 = vmax.f32 %v276_v53, 1e-24 }
 0x1a4   :  { %v322_v56 = vmul.f32 %v615_v54, %v305_v52  ;;  %vm328_vm0 = vweird.f32 %v615_v54 }
 0x1a5   :  { %616 = vrsqrt.f32 %v306_v55  ;;  %vm329_vm3 = vmor %vm327_vm1, %vm328_vm0  ;;  %vm337_vm4 = vweird.f32 %v306_v55 }
 0x1a6   :  { %v323_v57 = vmul.f32 %v615_v54, %v322_v56  ;;  %v290_v58 = vpop.xlane.xlu2 %289 }
 0x1a7   :  { %v313_v59 = vmax.f32 %v290_v58, 1e-24 }
 0x1a8   :  { %v324_v60 = vmul.f32 0.5, %v323_v57 }
 0x1a9   :  { %618 = vrsqrt.f32 %v313_v59  ;;  %vm407_vm7 = vweird.f32 %v313_v59 }
 0x1aa   :  { %v278_v61 = vpop.xlane.xlu1 %277  ;;  %v325_v0 = vsub.f32 1.5, %v324_v60 }
 0x1ab   :  { %v617_v62 = vpop.eup %616  ;;  %v961_v63 = vmax.f32 %v278_v61, 1e-24 }
 0x1ac   :  { %v332_v1 = vmul.f32 %v617_v62, %v306_v55  ;;  %v326_v7 = vmul.f32 %v615_v54, %v325_v0  ;;  %vm338_vm2 = vweird.f32 %v617_v62 }
 0x1ad   :  { %620 = vrsqrt.f32 %v961_v63  ;;  %vm339_vm5 = vmor %vm337_vm4, %vm338_vm2  ;;  %vm347_vm13 = vweird.f32 %v961_v63 }
 0x1ae   :  { %v333_v2 = vmul.f32 %v617_v62, %v332_v1  ;;  %v292_v3 = vpop.xlane.xlu0 %291  ;;  %v330_v19 = vsel %vm329_vm3, %v615_v54, %v326_v7 }
 0x1af   :  { %v964_v5 = vpop.eup %618  ;;  %v314_v48 = vmax.f32 %v292_v3, 1e-24  ;;  %v481_v29 = vmul.f32 %v330_v19, %v897_v4 }
 0x1b0   :  { %v334_v8 = vmul.f32 0.5, %v333_v2  ;;  %v402_v10 = vmul.f32 %v964_v5, %v313_v59  ;;  %vm408_vm6 = vweird.f32 %v964_v5 }
 0x1b1   :  { %622 = vrsqrt.f32 %v314_v48  ;;  %vm409_vm9 = vmor %vm407_vm7, %vm408_vm6  ;;  %vm417_vm11 = vweird.f32 %v314_v48 }
 0x1b2   :  { %v335_v11 = vsub.f32 1.5, %v334_v8  ;;  %v403_v13 = vmul.f32 %v964_v5, %v402_v10  ;;  %v280_v14 = vpop.xlane.xlu1 %279 }
 0x1b3   :  { %v968_v16 = vpop.eup %620  ;;  %v308_v17 = vmax.f32 %v280_v14, 1e-24 }
 0x1b4   :  { %v336_v20 = vmul.f32 %v617_v62, %v335_v11  ;;  %v404_v22 = vmul.f32 0.5, %v403_v13  ;;  %v342_v24 = vmul.f32 %v968_v16, %v961_v63  ;;  %vm348_vm10 = vweird.f32 %v968_v16 }
 0x1b5   :  { %624 = vrsqrt.f32 %v308_v17  ;;  %vm349_vm15 = vmor %vm347_vm13, %vm348_vm10  ;;  %vm357_vm0 = vweird.f32 %v308_v17 }
 0x1b6   :  { %v340_v25 = vsel %vm339_vm5, %v617_v62, %v336_v20  ;;  %v343_v26 = vmul.f32 %v968_v16, %v342_v24  ;;  %v405_v33 = vsub.f32 1.5, %v404_v22 }
 0x1b7   :  { %v623_v28 = vpop.eup %622  ;;  %v482_v30 = vmul.f32 %v340_v25, %v901_v6 }
 0x1b8   :  { %v344_v34 = vmul.f32 0.5, %v343_v26  ;;  %v412_v36 = vmul.f32 %v623_v28, %v314_v48  ;;  %v406_v4 = vmul.f32 %v964_v5, %v405_v33  ;;  %vm418_vm8 = vweird.f32 %v623_v28 }
 0x1b9   :  { %v536_v37 = vpack.c.bf16 %v482_v30, %v481_v29  ;;  %vm419_vm12 = vmor %vm417_vm11, %vm418_vm8 }
 0x1ba   :  { %v413_v38 = vmul.f32 %v623_v28, %v412_v36  ;;  %v282_v39 = vpop.xlane.xlu2 %281  ;;  %v294_v41 = vpop.xlane.xlu1 %293  ;;  %v345_v6 = vsub.f32 1.5, %v344_v34  ;;  %v410_v53 = vsel %vm409_vm9, %v964_v5, %v406_v4 }
 0x1bb   :  { %v625_v42 = vpop.eup %624  ;;  %537 = vst [vmem:[%s1096_s6] sm:$0xff] %v536_v37   ;;  %v979_v45 = vmax.f32 %v282_v39, 1e-24  ;;  %v981_v46 = vmax.f32 %v294_v41, 1e-24  ;;  %v489_v60 = vmul.f32 %v410_v53, %v905_v9 }
 0x1bc   :  { %v414_v47 = vmul.f32 0.5, %v413_v38  ;;  %v352_v50 = vmul.f32 %v625_v42, %v308_v17  ;;  %v346_v54 = vmul.f32 %v968_v16, %v345_v6  ;;  %vm358_vm14 = vweird.f32 %v625_v42 }
 0x1bd   :  { %626 = vrsqrt.f32 %v981_v46  ;;  %vm359_vm1 = vmor %vm357_vm0, %vm358_vm14  ;;  %vm427_vm3 = vweird.f32 %v981_v46  ;;  %vm367_vm9 = vweird.f32 %v979_v45 }
 0x1be   :  { %v415_v51 = vsub.f32 1.5, %v414_v47  ;;  %v353_v52 = vmul.f32 %v625_v42, %v352_v50  ;;  %628 = vrsqrt.f32 %v979_v45  ;;  %v350_v1 = vsel %vm349_vm15, %v968_v16, %v346_v54 }
 0x1bf   :  { %v483_v9 = vmul.f32 %v350_v1, %v909_v12 }
 0x1c0   :  { %v416_v55 = vmul.f32 %v623_v28, %v415_v51  ;;  %v354_v56 = vmul.f32 0.5, %v353_v52 }
 0x1c2   :  { %v420_v57 = vsel %vm419_vm12, %v623_v28, %v416_v55  ;;  %v355_v58 = vsub.f32 1.5, %v354_v56  ;;  %v296_v59 = vpop.xlane.xlu2 %295 }
 0x1c3   :  { %v490_v61 = vmul.f32 %v420_v57, %v913_v15  ;;  %v316_v62 = vmax.f32 %v296_v59, 1e-24  ;;  %v627_v0 = vpop.eup %626 }
 0x1c4   :  { %v356_v2 = vmul.f32 %v625_v42, %v355_v58  ;;  %v993_v3 = vpop.eup %628  ;;  %v422_v63 = vmul.f32 %v627_v0, %v981_v46  ;;  %vm428_vm2 = vweird.f32 %v627_v0 }
 0x1c5   :  { %v556_v5 = vpack.c.bf16 %v490_v61, %v489_v60  ;;  %630 = vrsqrt.f32 %v316_v62  ;;  %v362_v10 = vmul.f32 %v993_v3, %v979_v45  ;;  %vm429_vm5 = vmor %vm427_vm3, %vm428_vm2  ;;  %vm437_vm6 = vweird.f32 %v316_v62 }
 0x1c6   :  { %v360_v48 = vsel %vm359_vm1, %v625_v42, %v356_v2  ;;  %v298_v7 = vpop.xlane.xlu0 %297  ;;  %v423_v8 = vmul.f32 %v627_v0, %v422_v63  ;;  %vm368_vm8 = vweird.f32 %v993_v3 }
 0x1c7   :  { %576 = vst [vmem:[%s1096_s6 + $0x20] sm:$0xff] %v556_v5   ;;  %v484_v15 = vmul.f32 %v360_v48, %v917_v18  ;;  %v1003_v14 = vmax.f32 %v298_v7, 1e-24  ;;  %v363_v19 = vmul.f32 %v993_v3, %v362_v10  ;;  %vm1034_vm11 = vmor %vm367_vm9, %vm368_vm8 }
 0x1c8   :  { %v424_v13 = vmul.f32 0.5, %v423_v8 }
 0x1c9   :  { %v541_v11 = vpack.c.bf16 %v484_v15, %v483_v9  ;;  %v364_v26 = vmul.f32 0.5, %v363_v19 }
 0x1ca   :  { %v284_v16 = vpop.xlane.xlu2 %283  ;;  %v425_v20 = vsub.f32 1.5, %v424_v13 }
 0x1cb   :  { %v631_v17 = vpop.eup %630  ;;  %573 = vst [vmem:[%s1096_s6 + $0x8] sm:$0xff] %v541_v11   ;;  %v310_v12 = vmax.f32 %v284_v16, 1e-24  ;;  %v365_v38 = vsub.f32 1.5, %v364_v26 }
 0x1cc   :  { %v432_v22 = vmul.f32 %v631_v17, %v316_v62  ;;  %v426_v28 = vmul.f32 %v627_v0, %v425_v20  ;;  %vm438_vm4 = vweird.f32 %v631_v17 }
 0x1cd   :  { %632 = vrsqrt.f32 %v310_v12  ;;  %vm439_vm7 = vmor %vm437_vm6, %vm438_vm4  ;;  %v366_v54 = vmul.f32 %v993_v3, %v365_v38  ;;  %vm377_vm12 = vweird.f32 %v310_v12 }
 0x1ce   :  { %v433_v18 = vmul.f32 %v631_v17, %v432_v22  ;;  %634 = vrsqrt.f32 %v1003_v14  ;;  %v286_v24 = vpop.xlane.xlu0 %285  ;;  %v430_v39 = vsel %vm429_vm5, %v627_v0, %v426_v28  ;;  %vm447_vm5 = vweird.f32 %v1003_v14 }
 0x1cf   :  { %v1010_v25 = vmax.f32 %v286_v24, 1e-24  ;;  %v491_v50 = vmul.f32 %v430_v39, %v921_v21  ;;  %v370_v45 = vsel %vm1034_vm11, %v993_v3, %v366_v54 }
 0x1d0   :  { %v434_v29 = vmul.f32 0.5, %v433_v18  ;;  %v485_v15 = vmul.f32 %v370_v45, %v923_v23 }
 0x1d1   :  { %636 = vrsqrt.f32 %v1010_v25  ;;  %vm387_vm15 = vweird.f32 %v1010_v25 }
 0x1d2   :  { %v435_v30 = vsub.f32 1.5, %v434_v29  ;;  %v288_v33 = vpop.xlane.xlu1 %287 }
 0x1d3   :  { %v633_v34 = vpop.eup %632  ;;  %v1014_v36 = vmax.f32 %v288_v33, 1e-24 }
 0x1d4   :  { %v1016_v37 = vpop.eup %634  ;;  %v436_v41 = vmul.f32 %v631_v17, %v435_v30  ;;  %v372_v42 = vmul.f32 %v633_v34, %v310_v12  ;;  %vm378_vm10 = vweird.f32 %v633_v34 }
 0x1d5   :  { %638 = vrsqrt.f32 %v1014_v36  ;;  %v442_v52 = vmul.f32 %v1016_v37, %v1003_v14  ;;  %vm379_vm13 = vmor %vm377_vm12, %vm378_vm10  ;;  %vm397_vm2 = vweird.f32 %v1014_v36  ;;  %vm448_vm4 = vweird.f32 %v1016_v37 }
 0x1d6   :  { %v440_v4 = vsel %vm439_vm7, %v631_v17, %v436_v41  ;;  %v373_v6 = vmul.f32 %v633_v34, %v372_v42  ;;  %v302_v46 = vpop.xlane.xlu2 %301  ;;  %vm1066_vm6 = vmor %vm447_vm5, %vm448_vm4 }
 0x1d7   :  { %v1019_v47 = vpop.eup %636  ;;  %v492_v51 = vmul.f32 %v440_v4, %v929_v27  ;;  %v1025_v53 = vmax.f32 %v302_v46, 1e-24  ;;  %v443_v61 = vmul.f32 %v1016_v37, %v442_v52 }
 0x1d8   :  { %v374_v55 = vmul.f32 0.5, %v373_v6  ;;  %v382_v56 = vmul.f32 %v1019_v47, %v1010_v25  ;;  %vm388_vm14 = vweird.f32 %v1019_v47 }
 0x1d9   :  { %v561_v57 = vpack.c.bf16 %v492_v51, %v491_v50  ;;  %640 = vrsqrt.f32 %v1025_v53  ;;  %v444_v8 = vmul.f32 0.5, %v443_v61  ;;  %vm389_vm1 = vmor %vm387_vm15, %vm388_vm14  ;;  %vm467_vm11 = vweird.f32 %v1025_v53 }
 0x1da   :  { %v375_v21 = vsub.f32 1.5, %v374_v55  ;;  %v383_v27 = vmul.f32 %v1019_v47, %v382_v56  ;;  %v300_v58 = vpop.xlane.xlu1 %299 }
 0x1db   :  { %v639_v59 = vpop.eup %638  ;;  %577 = vst [vmem:[%s1096_s6 + $0x28] sm:$0xff] %v561_v57   ;;  %v318_v62 = vmax.f32 %v300_v58, 1e-24  ;;  %v445_v20 = vsub.f32 1.5, %v444_v8 }
 0x1dc   :  { %v376_v0 = vmul.f32 %v633_v34, %v375_v21  ;;  %v384_v1 = vmul.f32 0.5, %v383_v27  ;;  %v392_v2 = vmul.f32 %v639_v59, %v1014_v36  ;;  %vm398_vm0 = vweird.f32 %v639_v59 }
 0x1dd   :  { %642 = vrsqrt.f32 %v318_v62  ;;  %vm399_vm3 = vmor %vm397_vm2, %vm398_vm0  ;;  %v446_v29 = vmul.f32 %v1016_v37, %v445_v20  ;;  %vm457_vm8 = vweird.f32 %v318_v62 }
 0x1de   :  { %v380_v5 = vsel %vm379_vm13, %v633_v34, %v376_v0  ;;  %v385_v63 = vsub.f32 1.5, %v384_v1  ;;  %v393_v48 = vmul.f32 %v639_v59, %v392_v2  ;;  %v304_v7 = vpop.xlane.xlu0 %303 }
 0x1df   :  { %v1046_v9 = vpop.eup %640  ;;  %v486_v10 = vmul.f32 %v380_v5, %v935_v32  ;;  %v320_v11 = vmax.f32 %v304_v7, 1e-24  ;;  %v450_v6 = vsel %vm1066_vm6, %v1016_v37, %v446_v29 }
 0x1e0   :  { %v386_v3 = vmul.f32 %v1019_v47, %v385_v63  ;;  %v394_v13 = vmul.f32 0.5, %v393_v48  ;;  %v462_v16 = vmul.f32 %v1046_v9, %v1025_v53  ;;  %vm468_vm9 = vweird.f32 %v1046_v9 }
 0x1e1   :  { %v546_v17 = vpack.c.bf16 %v486_v10, %v485_v15  ;;  %644 = vrsqrt.f32 %v320_v11  ;;  %v493_v50 = vmul.f32 %v450_v6, %v933_v31  ;;  %vm469_vm13 = vmor %vm467_vm11, %vm468_vm9  ;;  %vm477_vm14 = vweird.f32 %v320_v11 }
 0x1e2   :  { %v395_v12 = vsub.f32 1.5, %v394_v13  ;;  %v463_v23 = vmul.f32 %v1046_v9, %v462_v16  ;;  %v390_v32 = vsel %vm389_vm1, %v1019_v47, %v386_v3 }
 0x1e3   :  { %v643_v19 = vpop.eup %642  ;;  %574 = vst [vmem:[%s1096_s6 + $0x10] sm:$0xff] %v546_v17   ;;  %v487_v30 = vmul.f32 %v390_v32, %v939_v35 }
 0x1e4   :  { %v396_v22 = vmul.f32 %v639_v59, %v395_v12  ;;  %v464_v18 = vmul.f32 0.5, %v463_v23  ;;  %v452_v24 = vmul.f32 %v643_v19, %v318_v62  ;;  %vm458_vm7 = vweird.f32 %v643_v19 }
 0x1e5   :  { %vm459_vm10 = vmor %vm457_vm8, %vm458_vm7 }
 0x1e6   :  { %v400_v25 = vsel %vm399_vm3, %v639_v59, %v396_v22  ;;  %v453_v26 = vmul.f32 %v643_v19, %v452_v24  ;;  %v465_v34 = vsub.f32 1.5, %v464_v18 }
 0x1e7   :  { %v645_v28 = vpop.eup %644  ;;  %v488_v33 = vmul.f32 %v400_v25, %v945_v40 }
 0x1e8   :  { %v454_v38 = vmul.f32 0.5, %v453_v26  ;;  %v472_v36 = vmul.f32 %v645_v28, %v320_v11  ;;  %v466_v35 = vmul.f32 %v1046_v9, %v465_v34  ;;  %vm478_vm12 = vweird.f32 %v645_v28 }
 0x1e9   :  { %v551_v39 = vpack.c.bf16 %v488_v33, %v487_v30  ;;  %vm479_vm15 = vmor %vm477_vm14, %vm478_vm12 }
 0x1ea   :  { %v455_v42 = vsub.f32 1.5, %v454_v38  ;;  %v473_v4 = vmul.f32 %v645_v28, %v472_v36  ;;  %v470_v51 = vsel %vm469_vm13, %v1046_v9, %v466_v35 }
 0x1eb   :  { %575 = vst [vmem:[%s1096_s6 + $0x18] sm:$0xff] %v551_v39   ;;  %v495_v56 = vmul.f32 %v470_v51, %v949_v43 }
 0x1ec   :  { %v456_v40 = vmul.f32 %v643_v19, %v455_v42  ;;  %v474_v14 = vmul.f32 0.5, %v473_v4 }
 0x1ee   :  { %v460_v46 = vsel %vm459_vm10, %v643_v19, %v456_v40  ;;  %v475_v47 = vsub.f32 1.5, %v474_v14 }
 0x1ef   :  { %v494_v37 = vmul.f32 %v460_v46, %v951_v44 }
 0x1f0   :  { %v476_v52 = vmul.f32 %v645_v28, %v475_v47 }
 0x1f1   :  { %v566_v54 = vpack.c.bf16 %v494_v37, %v493_v50 }
 0x1f2   :  { %v480_v55 = vsel %vm479_vm15, %v645_v28, %v476_v52 }
 0x1f3   :  { %578 = vst [vmem:[%s1096_s6 + $0x30] sm:$0xff] %v566_v54   ;;  %v496_v53 = vmul.f32 %v480_v55, %v957_v49 }
 0x1f5   :  { %v571_v57 = vpack.c.bf16 %v496_v53, %v495_v56 }
 0x1f7   :  { %579 = vst [vmem:[%s1096_s6 + $0x38] sm:$0xff] %v571_v57  }

</bundles_post_ra>
